<compile_context>
chip_gen: v7x
topology: tpu7x:2x2x1
jax: 0.10.0
libtpu: 0.0.40
codegen_flags: <defaults>
</compile_context>

<pallas_src>
import jax
import jax.numpy as jnp
from jax.experimental import pallas as pl
from jax.experimental.pallas import tpu as pltpu

SCALE_TRANSLATION = 0.01
_INV_SCALE = 1.0 / SCALE_TRANSLATION

_LANE_GROUP = 1024   # 8 sublanes * 128 lanes = one f32 vreg worth of elements
_MAX_TILE = 65536    # 2 * (19+2) * 4B * 65536 ~ 11 MiB < every scoped-VMEM default

# Packed feature-row layout of the [19, 8, Np/8] slab (per element n):
#   0..2   : GT 3-D center (x, y, z)
#   3..14  : prev_p2 flattened row-major (p00 p01 p02 p03 p10 ... p23)
#   15..16 : box2_proj_center (u, v)
#   17..18 : motion (dx, dz)


def _round_up(x, m):
    return ((x + m - 1) // m) * m


def _motion_loss_kernel(packed_ref, prev2d_ref, psum_ref):
    # packed_ref : [19, 8, L]  packed inputs, dense (8, L) tile per feature row
    # prev2d_ref : [2, 8, L]   projected (px, py)
    # psum_ref   : [1, 1, 1]   this block's partial sum of distances
    row = lambda r: packed_ref[r]                 # dense (8, L) load off the ref

    # Apply scaled motion to the 3-D center (x and z only).
    x = row(0) + row(17) * _INV_SCALE
    y = row(1)
    z = row(2) + row(18) * _INV_SCALE

    # bmm(prev_p2, [x, y, z, 1]^T) as per-lane fused multiply-adds (VPU).
    u = row(3) * x + row(4) * y + row(5) * z + row(6)
    v = row(7) * x + row(8) * y + row(9) * z + row(10)
    w = row(11) * x + row(12) * y + row(13) * z + row(14)

    # Perspective divide: EUP reciprocal + one Newton step, shared by px/py.
    inv_w = pl.reciprocal(w, approx=True)
    inv_w = inv_w * (2.0 - w * inv_w)

    px = u * inv_w
    py = v * inv_w

    prev2d_ref[0] = px                            # full unmasked (8, L) stores
    prev2d_ref[1] = py

    xe = px - row(15)
    ye = py - row(16)
    dis = jnp.sqrt(xe * xe + ye * ye)             # padded lanes give exactly 0

    part = jnp.sum(dis, axis=1, keepdims=True)    # (8, 1) cross-lane reduce
    part = jnp.sum(part, axis=0, keepdims=True)   # (1, 1) cross-sublane reduce
    psum_ref[...] = part.reshape(1, 1, 1)


def motion_loss(data, lane_tile=32768):
    """Pallas equivalent of MotionLoss.forward."""
    box_3d = data['box_3d']
    prev_p2 = data['prev_p2']
    box2_proj_center = data['box2_proj_center']
    motion = data['motion']
    # data['prev_box'] and data['prev_image'] are unused (as in the reference).

    N = box_3d.shape[0]
    f32 = jnp.float32

    if N == 0:
        nan = jnp.array(jnp.nan, f32)
        return ({'dis_error': nan, 'total_loss': nan},
                jnp.zeros((0, 2), f32), box2_proj_center)

    # Elements live on the (sublane, lane) plane of an (8, L) tile, so the
    # element tile must be a multiple of 8*128 = 1024 (and is VMEM-capped).
    tile = max(_LANE_GROUP,
               (min(lane_tile, _MAX_TILE) // _LANE_GROUP) * _LANE_GROUP)
    tile = min(tile, _round_up(N, _LANE_GROUP))
    Np = _round_up(N, tile)
    G = Np // tile
    L = Np // 8
    tl = tile // 8

    # Cheap host-side packing: one concatenate, one transpose, one pad.
    rows = jnp.concatenate([
        box_3d[:, 0:3].astype(f32),                 # 3
        prev_p2.reshape(N, 12).astype(f32),         # 12
        box2_proj_center[:, 0:2].astype(f32),       # 2
        motion[:, 0:2].astype(f32),                 # 2
    ], axis=1)                                      # [N, 19]
    packed = rows.T                                 # [19, N]
    if Np > N:
        packed = jnp.pad(packed, ((0, 0), (0, Np - N)))
        # Padded elements: w = 1 -> px = py = 0 -> dis = 0, so no in-kernel
        # mask is needed; we divide by the true N below.
        packed = packed.at[14, N:].set(1.0)
    packed = packed.reshape(19, 8, L)               # element n -> (n//L, n%L)

    cost = pl.CostEstimate(flops=40 * Np, transcendentals=2 * Np,
                           bytes_accessed=(19 + 2) * Np * 4 + G * 4)

    prev2d, psum = pl.pallas_call(
        _motion_loss_kernel,
        out_shape=(jax.ShapeDtypeStruct((2, 8, L), f32),
                   jax.ShapeDtypeStruct((G, 1, 1), f32)),
        grid=(G,),
        in_specs=[pl.BlockSpec((19, 8, tl), lambda i: (0, 0, i))],
        out_specs=(pl.BlockSpec((2, 8, tl), lambda i: (0, 0, i)),
                   pl.BlockSpec((1, 1, 1), lambda i: (i, 0, 0))),
        compiler_params=pltpu.CompilerParams(
            dimension_semantics=("parallel",)),
        cost_estimate=cost,
    )(packed)

    prev_center_2d = prev2d.reshape(2, Np)[:, :N].T          # [N, 2]
    dis_error = jnp.sum(psum) / N
    losses = {'dis_error': dis_error, 'total_loss': dis_error}
    return losses, prev_center_2d, box2_proj_center


def _reference(data):
    """Pure-JAX reference (mirrors the PyTorch code) for sanity checking."""
    box_3d = data['box_3d']
    motion = data['motion'] / SCALE_TRANSLATION
    prev_center_3d = box_3d[:, 0:3]
    prev_center_3d = prev_center_3d.at[:, 0].add(motion[:, 0])
    prev_center_3d = prev_center_3d.at[:, 2].add(motion[:, 1])
    ones = jnp.ones((prev_center_3d.shape[0], 1), prev_center_3d.dtype)
    hom = jnp.concatenate([prev_center_3d, ones], axis=1)[:, :, None]  # [N,4,1]
    proj = jnp.matmul(data['prev_p2'], hom)[:, :, 0]                   # [N,3]
    prev_center_2d = proj[:, 0:2] / proj[:, 2:3]
    xe = prev_center_2d[:, 0] - data['box2_proj_center'][:, 0]
    ye = prev_center_2d[:, 1] - data['box2_proj_center'][:, 1]
    dis = jnp.sqrt(xe ** 2 + ye ** 2).mean()
    return dis, prev_center_2d


def _make_data(key, N):
    k1, k2, k3, k4, k5, k6, k7 = jax.random.split(key, 7)

    # box_3d: [N, 7] (x, y, z, w, h, l, ry) — only first 3 cols used.
    xy = jax.random.uniform(k1, (N, 2), jnp.float32, -5.0, 5.0)
    z = jax.random.uniform(k2, (N, 1), jnp.float32, 10.0, 40.0)
    dims = jax.random.uniform(k3, (N, 4), jnp.float32, 1.0, 3.0)
    box_3d = jnp.concatenate([xy[:, 0:1], xy[:, 1:2], z, dims], axis=1)

    # prev_p2: camera-like [N, 3, 4] projection matrices.
    f, cx, cy = 700.0, 600.0, 180.0
    base_p2 = jnp.array([[f, 0.0, cx, 40.0],
                         [0.0, f, cy, 2.0],
                         [0.0, 0.0, 1.0, 0.003]], jnp.float32)
    prev_p2 = jnp.broadcast_to(base_p2, (N, 3, 4)) \
        + 0.01 * jax.random.normal(k4, (N, 3, 4), jnp.float32)

    # motion (already in SCALE_TRANSLATION units) and observed 2-D centers.
    motion = jax.random.uniform(k5, (N, 2), jnp.float32, -0.02, 0.02)
    box2_proj_center = jnp.concatenate(
        [jax.random.uniform(k6, (N, 1), jnp.float32, 0.0, 1200.0),
         jax.random.uniform(k7, (N, 1), jnp.float32, 0.0, 370.0)], axis=1)

    return {
        'box_3d': box_3d,
        'prev_box': jnp.zeros((N, 4), jnp.float32),            # unused
        'prev_p2': prev_p2,
        'prev_image': jnp.zeros((N, 3, 16, 16), jnp.float32),  # unused
        'box2_proj_center': box2_proj_center,
        'motion': motion,
    }


if __name__ == "__main__":
    # Primary small test (N=8, single grid block).
    data = _make_data(jax.random.PRNGKey(0), 8)
    losses, prev_center_2d, c2_out = motion_loss(data)
    jax.block_until_ready((losses['total_loss'], prev_center_2d, c2_out))

    ref_loss, ref_2d = _reference(data)
    assert jnp.allclose(losses['dis_error'], ref_loss, rtol=1e-4, atol=1e-3)
    assert jnp.allclose(prev_center_2d, ref_2d, rtol=1e-4, atol=1e-3)

    # Multi-block test: exercises the parallel grid, per-block partial sums
    # and the lane-padding trick (N=2500, tile=1024 -> 3 grid blocks).
    data2 = _make_data(jax.random.PRNGKey(3), 2500)
    losses2, prev2d_2, _ = motion_loss(data2, lane_tile=1024)
    jax.block_until_ready((losses2['total_loss'], prev2d_2))

    ref_loss2, ref_2d2 = _reference(data2)
    assert jnp.allclose(losses2['dis_error'], ref_loss2, rtol=1e-4, atol=1e-3)
    assert jnp.allclose(prev2d_2, ref_2d2, rtol=1e-4, atol=1e-3)

    print("KERNEL_OK")
</pallas_src>

<mosaic_0001>
module attributes {stable_mosaic.version = 11 : i64} {
  func.func @_motion_loss_kernel(%arg0: i32, %arg1: memref<19x8x128xf32, #tpu.memory_space<vmem>>, %arg2: memref<2x8x128xf32, #tpu.memory_space<vmem>>, %arg3: memref<1x1x1xf32, #tpu.memory_space<vmem>>) attributes {dimension_semantics = [#tpu.dimension_semantics<parallel>], iteration_bounds = array<i64: 1>, scalar_prefetch = 0 : i64, scratch_operands = 0 : i64, tpu.core_type = #tpu.core_type<tc>, window_params = [{transform_indices = @transform_0, window_bounds = array<i64: 19, 8, 128>}, {transform_indices = @transform_1, window_bounds = array<i64: 2, 8, 128>}, {transform_indices = @transform_2, window_bounds = array<i64: 1, 1, 1>}]} {
    %c0 = arith.constant 0 : index
    %c0_0 = arith.constant 0 : index
    %c0_1 = arith.constant 0 : index
    %0 = vector.load %arg1[%c0, %c0_0, %c0_1] : memref<19x8x128xf32, #tpu.memory_space<vmem>>, vector<1x8x128xf32>
    %1 = vector.shape_cast %0 : vector<1x8x128xf32> to vector<8x128xf32>
    %c17 = arith.constant 17 : index
    %c0_2 = arith.constant 0 : index
    %c0_3 = arith.constant 0 : index
    %2 = vector.load %arg1[%c17, %c0_2, %c0_3] : memref<19x8x128xf32, #tpu.memory_space<vmem>>, vector<1x8x128xf32>
    %3 = vector.shape_cast %2 : vector<1x8x128xf32> to vector<8x128xf32>
    %cst = arith.constant 1.000000e+02 : f32
    %4 = vector.broadcast %cst : f32 to vector<8x128xf32>
    %5 = arith.mulf %3, %4 : vector<8x128xf32>
    %6 = arith.addf %1, %5 : vector<8x128xf32>
    %c1 = arith.constant 1 : index
    %c0_4 = arith.constant 0 : index
    %c0_5 = arith.constant 0 : index
    %7 = vector.load %arg1[%c1, %c0_4, %c0_5] : memref<19x8x128xf32, #tpu.memory_space<vmem>>, vector<1x8x128xf32>
    %8 = vector.shape_cast %7 : vector<1x8x128xf32> to vector<8x128xf32>
    %c2 = arith.constant 2 : index
    %c0_6 = arith.constant 0 : index
    %c0_7 = arith.constant 0 : index
    %9 = vector.load %arg1[%c2, %c0_6, %c0_7] : memref<19x8x128xf32, #tpu.memory_space<vmem>>, vector<1x8x128xf32>
    %10 = vector.shape_cast %9 : vector<1x8x128xf32> to vector<8x128xf32>
    %c18 = arith.constant 18 : index
    %c0_8 = arith.constant 0 : index
    %c0_9 = arith.constant 0 : index
    %11 = vector.load %arg1[%c18, %c0_8, %c0_9] : memref<19x8x128xf32, #tpu.memory_space<vmem>>, vector<1x8x128xf32>
    %12 = vector.shape_cast %11 : vector<1x8x128xf32> to vector<8x128xf32>
    %cst_10 = arith.constant 1.000000e+02 : f32
    %13 = vector.broadcast %cst_10 : f32 to vector<8x128xf32>
    %14 = arith.mulf %12, %13 : vector<8x128xf32>
    %15 = arith.addf %10, %14 : vector<8x128xf32>
    %c3 = arith.constant 3 : index
    %c0_11 = arith.constant 0 : index
    %c0_12 = arith.constant 0 : index
    %16 = vector.load %arg1[%c3, %c0_11, %c0_12] : memref<19x8x128xf32, #tpu.memory_space<vmem>>, vector<1x8x128xf32>
    %17 = vector.shape_cast %16 : vector<1x8x128xf32> to vector<8x128xf32>
    %18 = arith.mulf %17, %6 : vector<8x128xf32>
    %c4 = arith.constant 4 : index
    %c0_13 = arith.constant 0 : index
    %c0_14 = arith.constant 0 : index
    %19 = vector.load %arg1[%c4, %c0_13, %c0_14] : memref<19x8x128xf32, #tpu.memory_space<vmem>>, vector<1x8x128xf32>
    %20 = vector.shape_cast %19 : vector<1x8x128xf32> to vector<8x128xf32>
    %21 = arith.mulf %20, %8 : vector<8x128xf32>
    %22 = arith.addf %18, %21 : vector<8x128xf32>
    %c5 = arith.constant 5 : index
    %c0_15 = arith.constant 0 : index
    %c0_16 = arith.constant 0 : index
    %23 = vector.load %arg1[%c5, %c0_15, %c0_16] : memref<19x8x128xf32, #tpu.memory_space<vmem>>, vector<1x8x128xf32>
    %24 = vector.shape_cast %23 : vector<1x8x128xf32> to vector<8x128xf32>
    %25 = arith.mulf %24, %15 : vector<8x128xf32>
    %26 = arith.addf %22, %25 : vector<8x128xf32>
    %c6 = arith.constant 6 : index
    %c0_17 = arith.constant 0 : index
    %c0_18 = arith.constant 0 : index
    %27 = vector.load %arg1[%c6, %c0_17, %c0_18] : memref<19x8x128xf32, #tpu.memory_space<vmem>>, vector<1x8x128xf32>
    %28 = vector.shape_cast %27 : vector<1x8x128xf32> to vector<8x128xf32>
    %29 = arith.addf %26, %28 : vector<8x128xf32>
    %c7 = arith.constant 7 : index
    %c0_19 = arith.constant 0 : index
    %c0_20 = arith.constant 0 : index
    %30 = vector.load %arg1[%c7, %c0_19, %c0_20] : memref<19x8x128xf32, #tpu.memory_space<vmem>>, vector<1x8x128xf32>
    %31 = vector.shape_cast %30 : vector<1x8x128xf32> to vector<8x128xf32>
    %32 = arith.mulf %31, %6 : vector<8x128xf32>
    %c8 = arith.constant 8 : index
    %c0_21 = arith.constant 0 : index
    %c0_22 = arith.constant 0 : index
    %33 = vector.load %arg1[%c8, %c0_21, %c0_22] : memref<19x8x128xf32, #tpu.memory_space<vmem>>, vector<1x8x128xf32>
    %34 = vector.shape_cast %33 : vector<1x8x128xf32> to vector<8x128xf32>
    %35 = arith.mulf %34, %8 : vector<8x128xf32>
    %36 = arith.addf %32, %35 : vector<8x128xf32>
    %c9 = arith.constant 9 : index
    %c0_23 = arith.constant 0 : index
    %c0_24 = arith.constant 0 : index
    %37 = vector.load %arg1[%c9, %c0_23, %c0_24] : memref<19x8x128xf32, #tpu.memory_space<vmem>>, vector<1x8x128xf32>
    %38 = vector.shape_cast %37 : vector<1x8x128xf32> to vector<8x128xf32>
    %39 = arith.mulf %38, %15 : vector<8x128xf32>
    %40 = arith.addf %36, %39 : vector<8x128xf32>
    %c10 = arith.constant 10 : index
    %c0_25 = arith.constant 0 : index
    %c0_26 = arith.constant 0 : index
    %41 = vector.load %arg1[%c10, %c0_25, %c0_26] : memref<19x8x128xf32, #tpu.memory_space<vmem>>, vector<1x8x128xf32>
    %42 = vector.shape_cast %41 : vector<1x8x128xf32> to vector<8x128xf32>
    %43 = arith.addf %40, %42 : vector<8x128xf32>
    %c11 = arith.constant 11 : index
    %c0_27 = arith.constant 0 : index
    %c0_28 = arith.constant 0 : index
    %44 = vector.load %arg1[%c11, %c0_27, %c0_28] : memref<19x8x128xf32, #tpu.memory_space<vmem>>, vector<1x8x128xf32>
    %45 = vector.shape_cast %44 : vector<1x8x128xf32> to vector<8x128xf32>
    %46 = arith.mulf %45, %6 : vector<8x128xf32>
    %c12 = arith.constant 12 : index
    %c0_29 = arith.constant 0 : index
    %c0_30 = arith.constant 0 : index
    %47 = vector.load %arg1[%c12, %c0_29, %c0_30] : memref<19x8x128xf32, #tpu.memory_space<vmem>>, vector<1x8x128xf32>
    %48 = vector.shape_cast %47 : vector<1x8x128xf32> to vector<8x128xf32>
    %49 = arith.mulf %48, %8 : vector<8x128xf32>
    %50 = arith.addf %46, %49 : vector<8x128xf32>
    %c13 = arith.constant 13 : index
    %c0_31 = arith.constant 0 : index
    %c0_32 = arith.constant 0 : index
    %51 = vector.load %arg1[%c13, %c0_31, %c0_32] : memref<19x8x128xf32, #tpu.memory_space<vmem>>, vector<1x8x128xf32>
    %52 = vector.shape_cast %51 : vector<1x8x128xf32> to vector<8x128xf32>
    %53 = arith.mulf %52, %15 : vector<8x128xf32>
    %54 = arith.addf %50, %53 : vector<8x128xf32>
    %c14 = arith.constant 14 : index
    %c0_33 = arith.constant 0 : index
    %c0_34 = arith.constant 0 : index
    %55 = vector.load %arg1[%c14, %c0_33, %c0_34] : memref<19x8x128xf32, #tpu.memory_space<vmem>>, vector<1x8x128xf32>
    %56 = vector.shape_cast %55 : vector<1x8x128xf32> to vector<8x128xf32>
    %57 = arith.addf %54, %56 : vector<8x128xf32>
    %58 = tpu.reciprocal %57 {approx = true} : vector<8x128xf32> -> vector<8x128xf32>
    %59 = arith.mulf %57, %58 : vector<8x128xf32>
    %cst_35 = arith.constant 2.000000e+00 : f32
    %60 = vector.broadcast %cst_35 : f32 to vector<8x128xf32>
    %61 = arith.subf %60, %59 : vector<8x128xf32>
    %62 = arith.mulf %58, %61 : vector<8x128xf32>
    %63 = arith.mulf %29, %62 : vector<8x128xf32>
    %64 = arith.mulf %43, %62 : vector<8x128xf32>
    %c0_36 = arith.constant 0 : index
    %c0_37 = arith.constant 0 : index
    %c0_38 = arith.constant 0 : index
    %65 = vector.load %arg2[%c0_36, %c0_37, %c0_38] : memref<2x8x128xf32, #tpu.memory_space<vmem>>, vector<1x8x128xf32>
    %66 = vector.shape_cast %65 : vector<1x8x128xf32> to vector<8x128xf32>
    %67 = vector.shape_cast %63 : vector<8x128xf32> to vector<1x8x128xf32>
    tpu.vector_store %arg2[%c0_36, %c0_37, %c0_38], %67 {strides = array<i32>} : memref<2x8x128xf32, #tpu.memory_space<vmem>>, vector<1x8x128xf32>,
    %c1_39 = arith.constant 1 : index
    %c0_40 = arith.constant 0 : index
    %c0_41 = arith.constant 0 : index
    %68 = vector.load %arg2[%c1_39, %c0_40, %c0_41] : memref<2x8x128xf32, #tpu.memory_space<vmem>>, vector<1x8x128xf32>
    %69 = vector.shape_cast %68 : vector<1x8x128xf32> to vector<8x128xf32>
    %70 = vector.shape_cast %64 : vector<8x128xf32> to vector<1x8x128xf32>
    tpu.vector_store %arg2[%c1_39, %c0_40, %c0_41], %70 {strides = array<i32>} : memref<2x8x128xf32, #tpu.memory_space<vmem>>, vector<1x8x128xf32>,
    %c15 = arith.constant 15 : index
    %c0_42 = arith.constant 0 : index
    %c0_43 = arith.constant 0 : index
    %71 = vector.load %arg1[%c15, %c0_42, %c0_43] : memref<19x8x128xf32, #tpu.memory_space<vmem>>, vector<1x8x128xf32>
    %72 = vector.shape_cast %71 : vector<1x8x128xf32> to vector<8x128xf32>
    %73 = arith.subf %63, %72 : vector<8x128xf32>
    %c16 = arith.constant 16 : index
    %c0_44 = arith.constant 0 : index
    %c0_45 = arith.constant 0 : index
    %74 = vector.load %arg1[%c16, %c0_44, %c0_45] : memref<19x8x128xf32, #tpu.memory_space<vmem>>, vector<1x8x128xf32>
    %75 = vector.shape_cast %74 : vector<1x8x128xf32> to vector<8x128xf32>
    %76 = arith.subf %64, %75 : vector<8x128xf32>
    %77 = arith.mulf %73, %73 : vector<8x128xf32>
    %78 = arith.mulf %76, %76 : vector<8x128xf32>
    %79 = arith.addf %77, %78 : vector<8x128xf32>
    %80 = math.sqrt %79 : vector<8x128xf32>
    %cst_46 = arith.constant dense<0.000000e+00> : vector<8xf32>
    %81 = vector.multi_reduction <add>, %80, %cst_46 [1] : vector<8x128xf32> to vector<8xf32>
    %82 = vector.shape_cast %81 : vector<8xf32> to vector<8x1xf32>
    %cst_47 = arith.constant dense<0.000000e+00> : vector<1xf32>
    %83 = vector.multi_reduction <add>, %82, %cst_47 [0] : vector<8x1xf32> to vector<1xf32>
    %84 = vector.shape_cast %83 : vector<1xf32> to vector<1x1xf32>
    %85 = vector.shape_cast %84 : vector<1x1xf32> to vector<1x1x1xf32>
    %c0_48 = arith.constant 0 : index
    %c0_49 = arith.constant 0 : index
    %c0_50 = arith.constant 0 : index
    %86 = vector.load %arg3[%c0_48, %c0_49, %c0_50] : memref<1x1x1xf32, #tpu.memory_space<vmem>>, vector<1x1x1xf32>
    tpu.vector_store %arg3[%c0_48, %c0_49, %c0_50], %85 {strides = array<i32>} : memref<1x1x1xf32, #tpu.memory_space<vmem>>, vector<1x1x1xf32>,
    return
  }
  func.func @transform_0(%arg0: i32) -> (i32, i32, i32) {
    %c0_i32 = arith.constant 0 : i32
    %c0_i32_0 = arith.constant 0 : i32
    %c0_i32_1 = arith.constant 0 : i32
    return %c0_i32, %c0_i32_0, %arg0 : i32, i32, i32
  }
  func.func @transform_1(%arg0: i32) -> (i32, i32, i32) {
    %c0_i32 = arith.constant 0 : i32
    %c0_i32_0 = arith.constant 0 : i32
    %c0_i32_1 = arith.constant 0 : i32
    return %c0_i32, %c0_i32_0, %arg0 : i32, i32, i32
  }
  func.func @transform_2(%arg0: i32) -> (i32, i32, i32) {
    %c0_i32 = arith.constant 0 : i32
    %c0_i32_0 = arith.constant 0 : i32
    %c0_i32_1 = arith.constant 0 : i32
    return %arg0, %c0_i32, %c0_i32_0 : i32, i32, i32
  }
}

</mosaic_0001>

<bundles_post_ra>
// kernel: tpu_custom_call.1
= control target key start
LH: loop header
LB: loop body
LE: loop exit
PB: predicated region body
PF: predicated region fallthrough
CT: control target
= control target key end

     0   :  { %8 = vsyncpa [#allocation3], 0  ;;  %s290_s0 = inlined_call_operand.hbm [shape: f32[19,8,128], index: 0, kind: input, shape index: {}]   ;;  %s291_s1 = inlined_call_operand.hbm [shape: f32[2,8,128], index: 1, kind: output, shape index: {0}]   ;;  %s292_s2 = inlined_call_operand.hbm [shape: f32[1,1,1], index: 2, kind: output, shape index: {1}]  }
   0x1   :  { %9 = vsyncpa [#allocation4], 0 }
   0x2   :  { %10 = vsyncpa [#allocation7], 0  ;;  %s228_s9 = smov [#allocation2]   ;;  %s156_s13 = scalar_lea.hbm %s290_s0, 2432 }
   0x3   :  { %s16_s10 = sshll.u32 %s228_s9, 4  ;;  %p157_p0 = scmp.ne.s32.totalorder %s290_s0, %s156_s13  ;;  %s17_s10 = int_to_ptr.vmem [resolvable:$true] %s16_s10 }
   0x4   :  { %p160_p1 = scmp.lt.u32.totalorder %s156_s13, %s290_s0 }
   0x6   :  { %p162_p2 = pnand %p160_p1, %p157_p0 }
   0x8   :  { %165 = shalt.err (!%p162_p2)
}
   0x9   :  { %s166_s18 = scalar_lea.vmem %s17_s10, 2432  ;;  %p171_p4 = scmp.lt.s32.totalorder %s17_s10, %s17_s10 }
   0xa   :  { %p167_p3 = scmp.ne.s32.totalorder %s17_s10, %s166_s18  ;;  %p172_p5 = scmp.lt.s32.totalorder %s166_s18, %s166_s18 }
   0xc   :  { %p173_p6 = por %p172_p5, %p171_p4 }
   0xe   :  { %p174_p7 = pnand %p173_p6, %p167_p3 }
  0x10   :  { %177 = shalt.err (!%p174_p7)
}
  0x11   :  { %s229_s19 = smov 128   ;;  %s230_s20 = smov 8  }
  0x12   :  { %22 = dma.hbm_to_vmem [thread:$0]  %s290_s0, 2432, %s17_s10, [#allocation3], %s229_s19, %s229_s19, %s230_s20  }
  0x13   :  { %222 = dma.done.wait [#allocation3], 2432  }
  0x14   :  { %223 = vsyncadd [#allocation3], 4294964864  ;;  %v26_v0 = vld [vmem:[#allocation2] sm:$0xff]  ;;  %v28_v1 = vld [vmem:[#allocation2 + $0x88] sm:$0xff]  ;;  %s231_s0 = smov [#allocation5]  }
  0x15   :  { %v29_v2 = vmul.f32 100.0, %v28_v1  ;;  %v34_v3 = vld [vmem:[#allocation2 + $0x10] sm:$0xff]  ;;  %v32_v5 = vld [vmem:[#allocation2 + $0x8] sm:$0xff]  ;;  %v68_v9 = vld [vmem:[#allocation2 + $0x58] sm:$0xff]  ;;  %s121_s23 = sshll.u32 %s231_s0, 4  ;;  %s122_s23 = int_to_ptr.vmem [resolvable:$true] %s121_s23 }
  0x16   :  { %v36_v4 = vld [vmem:[#allocation2 + $0x90] sm:$0xff]  ;;  %v71_v10 = vld [vmem:[#allocation2 + $0x60] sm:$0xff]  ;;  %v75_v13 = vld [vmem:[#allocation2 + $0x68] sm:$0xff]  ;;  %s178_s24 = scalar_lea.vmem %s122_s23, 256  ;;  %p183_p9 = scmp.lt.s32.totalorder %s122_s23, %s122_s23 }
  0x17   :  { %v37_v6 = vmul.f32 100.0, %v36_v4  ;;  %v30_v7 = vadd.f32 %v29_v2, %v26_v0  ;;  %v72_v12 = vmul.f32 %v71_v10, %v32_v5  ;;  %v79_v16 = vld [vmem:[#allocation2 + $0x70] sm:$0xff]  ;;  %v40_v18 = vld [vmem:[#allocation2 + $0x18] sm:$0xff]  ;;  %v43_v19 = vld [vmem:[#allocation2 + $0x20] sm:$0xff]  ;;  %p179_p8 = scmp.ne.s32.totalorder %s122_s23, %s178_s24  ;;  %p184_p10 = scmp.lt.s32.totalorder %s178_s24, %s178_s24 }
  0x18   :  { %v54_v20 = vld [vmem:[#allocation2 + $0x38] sm:$0xff]  ;;  %v57_v21 = vld [vmem:[#allocation2 + $0x40] sm:$0xff]  ;;  %v44_v24 = vmul.f32 %v43_v19, %v32_v5  ;;  %v47_v27 = vld [vmem:[#allocation2 + $0x28] sm:$0xff] }
  0x19   :  { %v38_v8 = vadd.f32 %v37_v6, %v34_v3  ;;  %v69_v11 = vmul.f32 %v68_v9, %v30_v7  ;;  %v41_v23 = vmul.f32 %v40_v18, %v30_v7  ;;  %v55_v25 = vmul.f32 %v54_v20, %v30_v7  ;;  %v61_v28 = vld [vmem:[#allocation2 + $0x48] sm:$0xff]  ;;  %v51_v36 = vld [vmem:[#allocation2 + $0x30] sm:$0xff]  ;;  %v91_v43 = vld [vmem:[#allocation2 + $0x78] sm:$0xff]  ;;  %p185_p11 = por %p184_p10, %p183_p9 }
  0x1a   :  { %v58_v26 = vmul.f32 %v57_v21, %v32_v5  ;;  %v65_v37 = vld [vmem:[#allocation2 + $0x50] sm:$0xff]  ;;  %v94_v44 = vld [vmem:[#allocation2 + $0x80] sm:$0xff] }
  0x1b   :  { %v76_v14 = vmul.f32 %v75_v13, %v38_v8  ;;  %v73_v15 = vadd.f32 %v72_v12, %v69_v11  ;;  %v45_v29 = vadd.f32 %v44_v24, %v41_v23  ;;  %v48_v30 = vmul.f32 %v47_v27, %v38_v8  ;;  %p186_p12 = pnand %p185_p11, %p179_p8 }
  0x1c   :  { %v59_v31 = vadd.f32 %v58_v26, %v55_v25  ;;  %v62_v32 = vmul.f32 %v61_v28, %v38_v8 }
  0x1d   :  { %v77_v17 = vadd.f32 %v76_v14, %v73_v15  ;;  %v49_v33 = vadd.f32 %v48_v30, %v45_v29 }
  0x1e   :  { %v63_v34 = vadd.f32 %v62_v32, %v59_v31 }
  0x1f   :  { %v80_v22 = vadd.f32 %v79_v16, %v77_v17  ;;  %v52_v39 = vadd.f32 %v51_v36, %v49_v33 }
  0x20   :  { %v66_v40 = vadd.f32 %v65_v37, %v63_v34 }
  0x21   :  { %152 = vrcp.f32 %v80_v22 }
  0x2b   :  { %v153_v35 = vpop.eup %152 }
  0x2c   :  { %v82_v38 = vmul.f32 %v153_v35, %v80_v22 }
  0x2e   :  { %v83_v41 = vsub.f32 2.0, %v82_v38 }
  0x30   :  { %v84_v42 = vmul.f32 %v153_v35, %v83_v41 }
  0x32   :  { %v85_v45 = vmul.f32 %v84_v42, %v52_v39  ;;  %v86_v46 = vmul.f32 %v84_v42, %v66_v40 }
  0x34   :  { %v92_v47 = vsub.f32 %v85_v45, %v91_v43  ;;  %v95_v48 = vsub.f32 %v86_v46, %v94_v44  ;;  %87 = vst [vmem:[#allocation5] sm:$0xff] %v85_v45  ;;  %89 = vst [vmem:[#allocation5 + $0x8] sm:$0xff] %v86_v46 }
  0x36   :  { %v96_v49 = vmul.f32 %v92_v47, %v92_v47  ;;  %v97_v50 = vmul.f32 %v95_v48, %v95_v48 }
  0x38   :  { %v98_v51 = vadd.f32 %v97_v50, %v96_v49 }
  0x3a   :  { %154 = vrsqrt.f32 %v98_v51  ;;  %vm101_vm0 = vcmp.eq.f32.partialorder %v98_v51, inf  ;;  %v104_v53 = vand.u32 2147483648, %v98_v51  ;;  %vm103_vm1 = vcmp.eq.f32.partialorder %v98_v51, 0.0 }
  0x44   :  { %v155_v52 = vpop.eup %154 }
  0x45   :  { %v100_v54 = vmul.f32 %v155_v52, %v98_v51 }
  0x47   :  { %v102_v55 = vsel %vm101_vm0, %v98_v51, %v100_v54 }
  0x48   :  { %v105_v56 = vsel %vm103_vm1, %v104_v53, %v102_v55 }
  0x49   :  { %106 = vadd.xlane.f32.xlu0 %v105_v56 }
  0x4a   :  { %189 = shalt.err (!%p186_p12)
}
  0x4b   :  { %s190_s27 = scalar_lea.hbm %s291_s1, 256 }
  0x4c   :  { %p191_p13 = scmp.ne.s32.totalorder %s291_s1, %s190_s27  ;;  %p194_p0 = scmp.lt.u32.totalorder %s190_s27, %s291_s1 }
  0x4e   :  { %p196_p1 = pnand %p194_p0, %p191_p13 }
  0x50   :  { %199 = shalt.err (!%p196_p1)
}
  0x51   :  { %127 = dma.vmem_to_hbm [thread:$0]  %s122_s23, 256, %s291_s1, [#allocation4], %s229_s19, %s229_s19, %s230_s20   ;;  %vm114_vm2 = vcmask 0  }
  0x52   :  { %s232_s6 = smov [#allocation6]  }
  0x53   :  { %s134_s7 = sshll.u32 %s232_s6, 4  ;;  %s135_s7 = int_to_ptr.vmem [resolvable:$true] %s134_s7 }
  0x54   :  { %s200_s8 = scalar_lea.vmem %s135_s7, 16  ;;  %s204_s9 = scalar_lea.vmem %s135_s7, 32 }
  0x55   :  { %p201_p2 = scmp.ne.s32.totalorder %s135_s7, %s200_s8  ;;  %p205_p3 = scmp.lt.s32.totalorder %s135_s7, %s135_s7 }
  0x56   :  { %p206_p4 = scmp.lt.s32.totalorder %s204_s9, %s200_s8 }
  0x58   :  { %p207_p5 = por %p206_p4, %p205_p3 }
  0x5a   :  { %p208_p6 = pnand %p207_p5, %p201_p2 }
  0xd6   :  { %v107_v57 = vpop.xlane.xlu0 %106 }
  0xd7   :  { %v108_v58 = vrot.slane %v107_v57, 4 }
  0xd9   :  { %v109_v59 = vadd.f32 %v108_v58, %v107_v57 }
  0xdb   :  { %v110_v60 = vrot.slane %v109_v59, 2 }
  0xdd   :  { %v111_v61 = vadd.f32 %v110_v60, %v109_v59 }
  0xdf   :  { %v112_v62 = vrot.slane %v111_v61, 1 }
  0xe1   :  { %v113_v63 = vadd.f32 %v112_v62, %v111_v61 }
  0xe3   :  { %115 = vst.msk [vmem:[#allocation6] sm:$0x1] %vm114_vm2, %v113_v63 }
  0xe4   :  { %211 = shalt.err (!%p208_p6)
}
  0xe5   :  { %s212_s11 = scalar_lea.hbm %s292_s2, 16 }
  0xe6   :  { %p213_p7 = scmp.ne.s32.totalorder %s292_s2, %s212_s11  ;;  %p216_p8 = scmp.lt.u32.totalorder %s212_s11, %s292_s2 }
  0xe8   :  { %p218_p9 = pnand %p216_p8, %p213_p7 }
  0xea   :  { %221 = shalt.err (!%p218_p9)
}
  0xeb   :  { %137 = dma.vmem_to_hbm [thread:$0]  %s135_s7, 16, %s292_s2, [#allocation7]  }
  0xec   :  { %224 = dma.done.wait [#allocation4], 256  }
  0xed   :  { %225 = vsyncadd [#allocation4], 4294967040 }
  0xee   :  { %226 = dma.done.wait [#allocation7], 16  }
  0xef   :  { %227 = vsyncadd [#allocation7], 4294967280 }
  0xf0   :  { %144 = vsyncpa [#allocation3], 1 }
  0xf1   :  { %145 = vsyncpa [#allocation4], 1 }
  0xf2   :  { %146 = vsyncpa [#allocation7], 1 }

</bundles_post_ra>
